<compile_context>
chip_gen: v5e
topology: v5e:2x2
jax: 0.10.0
libtpu: 0.0.40
codegen_flags: <defaults>
</compile_context>

<pallas_src>
import jax
import jax.numpy as jnp
from jax import lax
from jax.experimental import pallas as pl
from jax.experimental.pallas import tpu as pltpu

IN_FEATURES = 400
HIDDEN1 = 64
HIDDEN2 = 16
NUM_CLASSES = 3
CLASS_PAD = 8  # classes padded to one sublane group; rows 3..7 are exact zeros


def mlp_kernel(x_ref, w1_ref, b1_ref, w2_ref, b2_ref, w3t_ref, b3t_ref, o_ref):
    # `x.to(torch.float32)` semantics: everything stays f32 (cast is a no-op for
    # f32 inputs; if a fused producer hands us bf16 we still compute in f32).
    x = x_ref[...].astype(jnp.float32)

    # Linear(400, 64) + ReLU
    h1 = jnp.dot(x, w1_ref[...], preferred_element_type=jnp.float32) + b1_ref[...]
    h1 = jnp.maximum(h1, 0.0)

    # Linear(64, 16) + ReLU
    h2 = jnp.dot(h1, w2_ref[...], preferred_element_type=jnp.float32) + b2_ref[...]
    h2 = jnp.maximum(h2, 0.0)

    # Dropout() -> identity in eval mode.
    # TODO(synk): training-mode dropout via pltpu.prng_seed/prng_random_bits.

    # Linear(16, 3) computed classes-major on the MXU:
    #   logits_t[c, b] = sum_k w3t[c, k] * h2[b, k]          -> (8, tile_b)
    # Padded class rows (3..7) have zero weights and a -1e30 bias, so after the
    # max-subtracted exp they are exactly 0 and do not affect the softmax.
    logits_t = lax.dot_general(
        w3t_ref[...], h2,
        dimension_numbers=(((1,), (1,)), ((), ())),
        preferred_element_type=jnp.float32,
    ) + b3t_ref[...]

    # Softmax over the class axis (axis 0) — numerically stable, exact divide.
    m = jnp.max(logits_t, axis=0, keepdims=True)
    e = jnp.exp(logits_t - m)
    denom = jnp.sum(e, axis=0, keepdims=True)
    o_ref[...] = (e / denom).astype(o_ref.dtype)


def prepare_params(params):
    """One-time parameter preprocessing (hoisted out of the forward path).

    Returns weights formatted for the kernel: the 3-wide head is transposed to
    classes-major and padded to 8 rows; padded rows get a -1e30 bias so their
    softmax probability is exactly zero.
    """
    w1, b1, w2, b2, w3, b3 = params
    w3t = jnp.zeros((CLASS_PAD, HIDDEN2), jnp.float32).at[:NUM_CLASSES, :].set(w3.T)
    b3t = (jnp.full((CLASS_PAD, 1), -1e30, jnp.float32)
           .at[:NUM_CLASSES, :].set(b3.reshape(-1, 1)))
    return (w1.astype(jnp.float32), b1.astype(jnp.float32),
            w2.astype(jnp.float32), b2.astype(jnp.float32), w3t, b3t)


def mlp_forward(x, prepped_params, *, tile_b=2048):
    """Forward pass.  `prepped_params` must come from prepare_params()."""
    w1, b1, w2, b2, w3t, b3t = prepped_params
    B, F = x.shape
    assert F == IN_FEATURES

    # Faithful to x.to(torch.float32); no-op for f32 inputs.
    x = x.astype(jnp.float32)

    # Batch tiling: single tile for small batches, otherwise multiples of 128
    # so the classes-major (8, tile_b) store stays lane-dense and unmasked.
    if B <= tile_b:
        tile_b = max(8, pl.cdiv(B, 8) * 8)
        b_pad = tile_b
    else:
        tile_b = max(256, (tile_b // 128) * 128)
        b_pad = pl.cdiv(B, tile_b) * tile_b
    if b_pad != B:
        x = jnp.pad(x, ((0, b_pad - B), (0, 0)))
    grid = (b_pad // tile_b,)

    def const_map(i):
        return (0, 0)

    out = pl.pallas_call(
        mlp_kernel,
        out_shape=jax.ShapeDtypeStruct((CLASS_PAD, b_pad), jnp.float32),
        grid=grid,
        in_specs=[
            pl.BlockSpec((tile_b, IN_FEATURES), lambda i: (i, 0)),  # x: batch-tiled
            pl.BlockSpec(w1.shape, const_map),   # weights/biases: VMEM-resident,
            pl.BlockSpec(b1.shape, const_map),   # DMA'd once (constant block idx)
            pl.BlockSpec(w2.shape, const_map),
            pl.BlockSpec(b2.shape, const_map),
            pl.BlockSpec(w3t.shape, const_map),
            pl.BlockSpec(b3t.shape, const_map),
        ],
        out_specs=pl.BlockSpec((CLASS_PAD, tile_b), lambda i: (0, i)),
        compiler_params=pltpu.CompilerParams(
            dimension_semantics=("parallel",),
            vmem_limit_bytes=32 * 1024 * 1024,
        ),
    )(x, w1, b1, w2, b2, w3t, b3t)

    # Classes-major -> (B, 3); touches only ~12 useful bytes/row.
    return out[:NUM_CLASSES, :B].T


def mlp_reference(x, params):
    # Pure-JAX, pure-f32 reference faithful to the PyTorch module.
    w1, b1, w2, b2, w3, b3 = params
    xf = x.astype(jnp.float32)
    h1 = jnp.maximum(jnp.dot(xf, w1) + b1, 0.0)
    h2 = jnp.maximum(jnp.dot(h1, w2) + b2, 0.0)
    logits = jnp.dot(h2, w3) + b3
    return jax.nn.softmax(logits, axis=1)


def init_params(key):
    # Deterministic synthetic init (nn.Linear weights stored transposed:
    # (in_features, out_features)).
    k1, k2, k3, k4, k5, k6 = jax.random.split(key, 6)
    w1 = jax.random.normal(k1, (IN_FEATURES, HIDDEN1), jnp.float32) * 0.05
    b1 = jax.random.normal(k2, (1, HIDDEN1), jnp.float32) * 0.05
    w2 = jax.random.normal(k3, (HIDDEN1, HIDDEN2), jnp.float32) * 0.1
    b2 = jax.random.normal(k4, (1, HIDDEN2), jnp.float32) * 0.1
    w3 = jax.random.normal(k5, (HIDDEN2, NUM_CLASSES), jnp.float32) * 0.2
    b3 = jax.random.normal(k6, (1, NUM_CLASSES), jnp.float32) * 0.2
    return (w1, b1, w2, b2, w3, b3)


if __name__ == "__main__":
    key = jax.random.PRNGKey(0)
    k_param, k_x, k_x2 = jax.random.split(key, 3)
    params = init_params(k_param)
    prepped = prepare_params(params)

    # Small batch: single grid step.
    batch = 32
    x = jax.random.normal(k_x, (batch, IN_FEATURES), jnp.float32)
    out = jax.block_until_ready(mlp_forward(x, prepped))
    assert out.shape == (batch, NUM_CLASSES)
    assert jnp.allclose(jnp.sum(out, axis=-1), 1.0, atol=1e-3)
    ref = mlp_reference(x, params)
    assert jnp.allclose(out, ref, atol=2e-3), float(jnp.max(jnp.abs(out - ref)))

    # Larger batch: exercises the multi-step grid and batch padding.
    batch2 = 600
    x2 = jax.random.normal(k_x2, (batch2, IN_FEATURES), jnp.float32)
    out2 = jax.block_until_ready(mlp_forward(x2, prepped, tile_b=256))
    assert out2.shape == (batch2, NUM_CLASSES)
    assert jnp.allclose(jnp.sum(out2, axis=-1), 1.0, atol=1e-3)
    ref2 = mlp_reference(x2, params)
    assert jnp.allclose(out2, ref2, atol=2e-3), float(jnp.max(jnp.abs(out2 - ref2)))

    print("KERNEL_OK")
</pallas_src>

<mosaic_0001>
module attributes {stable_mosaic.version = 11 : i64} {
  func.func @mlp_kernel(%arg0: i32, %arg1: memref<32x400xf32, #tpu.memory_space<vmem>>, %arg2: memref<400x64xf32, #tpu.memory_space<vmem>>, %arg3: memref<1x64xf32, #tpu.memory_space<vmem>>, %arg4: memref<64x16xf32, #tpu.memory_space<vmem>>, %arg5: memref<1x16xf32, #tpu.memory_space<vmem>>, %arg6: memref<8x16xf32, #tpu.memory_space<vmem>>, %arg7: memref<8x1xf32, #tpu.memory_space<vmem>>, %arg8: memref<8x32xf32, #tpu.memory_space<vmem>>) attributes {dimension_semantics = [#tpu.dimension_semantics<parallel>], iteration_bounds = array<i64: 1>, scalar_prefetch = 0 : i64, scratch_operands = 0 : i64, tpu.core_type = #tpu.core_type<tc>, window_params = [{transform_indices = @transform_0, window_bounds = array<i64: 32, 400>}, {pipeline_mode = #tpu.pipeline_mode<synchronous>, transform_indices = @transform_1, window_bounds = array<i64: 400, 64>}, {pipeline_mode = #tpu.pipeline_mode<synchronous>, transform_indices = @transform_2, window_bounds = array<i64: 1, 64>}, {pipeline_mode = #tpu.pipeline_mode<synchronous>, transform_indices = @transform_3, window_bounds = array<i64: 64, 16>}, {pipeline_mode = #tpu.pipeline_mode<synchronous>, transform_indices = @transform_4, window_bounds = array<i64: 1, 16>}, {pipeline_mode = #tpu.pipeline_mode<synchronous>, transform_indices = @transform_5, window_bounds = array<i64: 8, 16>}, {pipeline_mode = #tpu.pipeline_mode<synchronous>, transform_indices = @transform_6, window_bounds = array<i64: 8, 1>}, {transform_indices = @transform_7, window_bounds = array<i64: 8, 32>}]} {
    %c0 = arith.constant 0 : index
    %c0_0 = arith.constant 0 : index
    %0 = vector.load %arg1[%c0, %c0_0] : memref<32x400xf32, #tpu.memory_space<vmem>>, vector<32x400xf32>
    %c0_1 = arith.constant 0 : index
    %c0_2 = arith.constant 0 : index
    %1 = vector.load %arg2[%c0_1, %c0_2] : memref<400x64xf32, #tpu.memory_space<vmem>>, vector<400x64xf32>
    %cst = arith.constant dense<0.000000e+00> : vector<32x64xf32>
    %2 = tpu.matmul %0, %1, %cst {dimension_numbers = #tpu.dot_dimension_numbers<[1], [0], [0], [1], [0, 0, 1, 1], [], []>} : vector<32x400xf32>, vector<400x64xf32>, vector<32x64xf32> -> vector<32x64xf32>
    %c0_3 = arith.constant 0 : index
    %c0_4 = arith.constant 0 : index
    %3 = vector.load %arg3[%c0_3, %c0_4] : memref<1x64xf32, #tpu.memory_space<vmem>>, vector<1x64xf32>
    %4 = vector.broadcast %3 : vector<1x64xf32> to vector<32x64xf32>
    %5 = arith.addf %2, %4 : vector<32x64xf32>
    %cst_5 = arith.constant 0.000000e+00 : f32
    %6 = vector.broadcast %cst_5 : f32 to vector<32x64xf32>
    %7 = arith.maximumf %5, %6 : vector<32x64xf32>
    %c0_6 = arith.constant 0 : index
    %c0_7 = arith.constant 0 : index
    %8 = vector.load %arg4[%c0_6, %c0_7] : memref<64x16xf32, #tpu.memory_space<vmem>>, vector<64x16xf32>
    %cst_8 = arith.constant dense<0.000000e+00> : vector<32x16xf32>
    %9 = tpu.matmul %7, %8, %cst_8 {dimension_numbers = #tpu.dot_dimension_numbers<[1], [0], [0], [1], [0, 0, 1, 1], [], []>} : vector<32x64xf32>, vector<64x16xf32>, vector<32x16xf32> -> vector<32x16xf32>
    %c0_9 = arith.constant 0 : index
    %c0_10 = arith.constant 0 : index
    %10 = vector.load %arg5[%c0_9, %c0_10] : memref<1x16xf32, #tpu.memory_space<vmem>>, vector<1x16xf32>
    %11 = vector.broadcast %10 : vector<1x16xf32> to vector<32x16xf32>
    %12 = arith.addf %9, %11 : vector<32x16xf32>
    %cst_11 = arith.constant 0.000000e+00 : f32
    %13 = vector.broadcast %cst_11 : f32 to vector<32x16xf32>
    %14 = arith.maximumf %12, %13 : vector<32x16xf32>
    %c0_12 = arith.constant 0 : index
    %c0_13 = arith.constant 0 : index
    %15 = vector.load %arg6[%c0_12, %c0_13] : memref<8x16xf32, #tpu.memory_space<vmem>>, vector<8x16xf32>
    %cst_14 = arith.constant dense<0.000000e+00> : vector<8x32xf32>
    %16 = tpu.matmul %15, %14, %cst_14 {dimension_numbers = #tpu.dot_dimension_numbers<[1], [1], [0], [0], [0, 0, 1, 0], [], []>} : vector<8x16xf32>, vector<32x16xf32>, vector<8x32xf32> -> vector<8x32xf32>
    %c0_15 = arith.constant 0 : index
    %c0_16 = arith.constant 0 : index
    %17 = vector.load %arg7[%c0_15, %c0_16] : memref<8x1xf32, #tpu.memory_space<vmem>>, vector<8x1xf32>
    %18 = vector.broadcast %17 : vector<8x1xf32> to vector<8x32xf32>
    %19 = arith.addf %16, %18 : vector<8x32xf32>
    %cst_17 = arith.constant dense<0xFF800000> : vector<32xf32>
    %20 = vector.multi_reduction <maximumf>, %19, %cst_17 [0] : vector<8x32xf32> to vector<32xf32>
    %21 = vector.shape_cast %20 : vector<32xf32> to vector<1x32xf32>
    %22 = vector.broadcast %21 : vector<1x32xf32> to vector<8x32xf32>
    %23 = arith.subf %19, %22 : vector<8x32xf32>
    %24 = math.exp %23 : vector<8x32xf32>
    %cst_18 = arith.constant dense<0.000000e+00> : vector<32xf32>
    %25 = vector.multi_reduction <add>, %24, %cst_18 [0] : vector<8x32xf32> to vector<32xf32>
    %26 = vector.shape_cast %25 : vector<32xf32> to vector<1x32xf32>
    %27 = vector.broadcast %26 : vector<1x32xf32> to vector<8x32xf32>
    %28 = arith.divf %24, %27 : vector<8x32xf32>
    %c0_19 = arith.constant 0 : index
    %c0_20 = arith.constant 0 : index
    %29 = vector.load %arg8[%c0_19, %c0_20] : memref<8x32xf32, #tpu.memory_space<vmem>>, vector<8x32xf32>
    tpu.vector_store %arg8[%c0_19, %c0_20], %28 {strides = array<i32>} : memref<8x32xf32, #tpu.memory_space<vmem>>, vector<8x32xf32>,
    return
  }
  func.func @transform_0(%arg0: i32) -> (i32, i32) {
    %c0_i32 = arith.constant 0 : i32
    %c0_i32_0 = arith.constant 0 : i32
    return %arg0, %c0_i32 : i32, i32
  }
  func.func @transform_1(%arg0: i32) -> (i32, i32) {
    %c0_i32 = arith.constant 0 : i32
    %c0_i32_0 = arith.constant 0 : i32
    %c0_i32_1 = arith.constant 0 : i32
    return %c0_i32, %c0_i32_0 : i32, i32
  }
  func.func @transform_2(%arg0: i32) -> (i32, i32) {
    %c0_i32 = arith.constant 0 : i32
    %c0_i32_0 = arith.constant 0 : i32
    %c0_i32_1 = arith.constant 0 : i32
    return %c0_i32, %c0_i32_0 : i32, i32
  }
  func.func @transform_3(%arg0: i32) -> (i32, i32) {
    %c0_i32 = arith.constant 0 : i32
    %c0_i32_0 = arith.constant 0 : i32
    %c0_i32_1 = arith.constant 0 : i32
    return %c0_i32, %c0_i32_0 : i32, i32
  }
  func.func @transform_4(%arg0: i32) -> (i32, i32) {
    %c0_i32 = arith.constant 0 : i32
    %c0_i32_0 = arith.constant 0 : i32
    %c0_i32_1 = arith.constant 0 : i32
    return %c0_i32, %c0_i32_0 : i32, i32
  }
  func.func @transform_5(%arg0: i32) -> (i32, i32) {
    %c0_i32 = arith.constant 0 : i32
    %c0_i32_0 = arith.constant 0 : i32
    %c0_i32_1 = arith.constant 0 : i32
    return %c0_i32, %c0_i32_0 : i32, i32
  }
  func.func @transform_6(%arg0: i32) -> (i32, i32) {
    %c0_i32 = arith.constant 0 : i32
    %c0_i32_0 = arith.constant 0 : i32
    %c0_i32_1 = arith.constant 0 : i32
    return %c0_i32, %c0_i32_0 : i32, i32
  }
  func.func @transform_7(%arg0: i32) -> (i32, i32) {
    %c0_i32 = arith.constant 0 : i32
    %c0_i32_0 = arith.constant 0 : i32
    return %c0_i32, %arg0 : i32, i32
  }
}

</mosaic_0001>

<bundles_post_ra>
// kernel: tpu_custom_call.1
= control target key start
LH: loop header
LB: loop body
LE: loop exit
PB: predicated region body
PF: predicated region fallthrough
CT: control target
= control target key end

     0   :  { %vm97_vm0 = vcmask 130048   ;;  %s723_s0 = inlined_call_operand.vmem [shape: f32[32,400], index: 0, kind: input, shape index: {}]   ;;  %s724_s1 = inlined_call_operand.vmem [shape: f32[400,64], index: 1, kind: input, shape index: {}]   ;;  %s725_s2 = inlined_call_operand.vmem [shape: f32[1,64], index: 2, kind: input, shape index: {}]   ;;  %s726_s3 = inlined_call_operand.vmem [shape: f32[64,16], index: 3, kind: input, shape index: {}]   ;;  %s727_s4 = inlined_call_operand.vmem [shape: f32[1,16], index: 4, kind: input, shape index: {}]   ;;  %s728_s5 = inlined_call_operand.vmem [shape: f32[8,16], index: 5, kind: input, shape index: {}]   ;;  %s729_s6 = inlined_call_operand.vmem [shape: f32[8,1], index: 6, kind: input, shape index: {}]   ;;  %s730_s7 = inlined_call_operand.hbm [shape: f32[8,32], index: 7, kind: output, shape index: {}]  }
   0x1   :  { %v90_v0 = vld [vmem:[%s724_s1 + $0x178] sm:$0xff]  ;;  %v89_v2 = vld [vmem:[%s724_s1 + $0x170] sm:$0xff]  ;;  %v88_v5 = vld [vmem:[%s724_s1 + $0x168] sm:$0xff] }
   0x2   :  { %v58_v1 = vld [vmem:[%s724_s1 + $0x78] sm:$0xff]  ;;  %168 = vmatpush.msra.mxu2 %v90_v0  ;;  %v57_v3 = vld [vmem:[%s724_s1 + $0x70] sm:$0xff]  ;;  %v56_v6 = vld [vmem:[%s724_s1 + $0x68] sm:$0xff] }
   0x3   :  { %110 = vmatpush.msra.mxu0 %v58_v1  ;;  %v74_v4 = vld [vmem:[%s724_s1 + $0xf8] sm:$0xff]  ;;  %v73_v7 = vld [vmem:[%s724_s1 + $0xf0] sm:$0xff]  ;;  %v72_v8 = vld [vmem:[%s724_s1 + $0xe8] sm:$0xff] }
   0x4   :  { %139 = vmatpush.msra.mxu1 %v74_v4  ;;  %169 = vmatpush.msra.mxu2 %v89_v2  ;;  %v87_v9 = vld [vmem:[%s724_s1 + $0x160] sm:$0xff]  ;;  %v86_v12 = vld [vmem:[%s724_s1 + $0x158] sm:$0xff]  ;;  %v85_v15 = vld [vmem:[%s724_s1 + $0x150] sm:$0xff] }
   0x5   :  { %111 = vmatpush.msra.mxu0 %v57_v3  ;;  %v55_v10 = vld [vmem:[%s724_s1 + $0x60] sm:$0xff]  ;;  %v54_v13 = vld [vmem:[%s724_s1 + $0x58] sm:$0xff]  ;;  %v53_v16 = vld [vmem:[%s724_s1 + $0x50] sm:$0xff] }
   0x6   :  { %140 = vmatpush.msra.mxu1 %v73_v7  ;;  %170 = vmatpush.msra.mxu2 %v88_v5  ;;  %v71_v11 = vld [vmem:[%s724_s1 + $0xe0] sm:$0xff]  ;;  %v70_v14 = vld [vmem:[%s724_s1 + $0xd8] sm:$0xff]  ;;  %v69_v17 = vld [vmem:[%s724_s1 + $0xd0] sm:$0xff] }
   0x7   :  { %112 = vmatpush.msra.mxu0 %v56_v6  ;;  %v84_v18 = vld [vmem:[%s724_s1 + $0x148] sm:$0xff]  ;;  %v83_v21 = vld [vmem:[%s724_s1 + $0x140] sm:$0xff]  ;;  %v82_v24 = vld [vmem:[%s724_s1 + $0x138] sm:$0xff] }
   0x8   :  { %141 = vmatpush.msra.mxu1 %v72_v8  ;;  %171 = vmatpush.msra.mxu2 %v87_v9  ;;  %v52_v19 = vld [vmem:[%s724_s1 + $0x48] sm:$0xff]  ;;  %v51_v22 = vld [vmem:[%s724_s1 + $0x40] sm:$0xff]  ;;  %v50_v25 = vld [vmem:[%s724_s1 + $0x38] sm:$0xff] }
   0x9   :  { %113 = vmatpush.msra.mxu0 %v55_v10  ;;  %v68_v20 = vld [vmem:[%s724_s1 + $0xc8] sm:$0xff]  ;;  %v67_v23 = vld [vmem:[%s724_s1 + $0xc0] sm:$0xff]  ;;  %v66_v26 = vld [vmem:[%s724_s1 + $0xb8] sm:$0xff] }
   0xa   :  { %142 = vmatpush.msra.mxu1 %v71_v11  ;;  %172 = vmatpush.msra.mxu2 %v86_v12  ;;  %v92_v27 = vld [vmem:[%s724_s1 + $0x188] sm:$0xff]  ;;  %v81_v28 = vld [vmem:[%s724_s1 + $0x130] sm:$0xff]  ;;  %v91_v30 = vld [vmem:[%s724_s1 + $0x180] sm:$0xff] }
   0xb   :  { %114 = vmatpush.msra.mxu0 %v54_v13  ;;  %v49_v29 = vld [vmem:[%s724_s1 + $0x30] sm:$0xff]  ;;  %211 = vmatpush.msra.mxu3 %v92_v27  ;;  %v30_v32 = vld [vmem:[%s723_s0 + $0x18] sm:$0xff]  ;;  %v80_v33 = vld [vmem:[%s724_s1 + $0x128] sm:$0xff] }
   0xc   :  { %143 = vmatpush.msra.mxu1 %v70_v14  ;;  %173 = vmatpush.msra.mxu2 %v85_v15  ;;  %v65_v31 = vld [vmem:[%s724_s1 + $0xb0] sm:$0xff]  ;;  %v48_v34 = vld [vmem:[%s724_s1 + $0x28] sm:$0xff]  ;;  %v79_v36 = vld [vmem:[%s724_s1 + $0x120] sm:$0xff] }
   0xd   :  { %115 = vmatpush.msra.mxu0 %v53_v16  ;;  %212 = vmatpush.msra.mxu3 %v91_v30  ;;  %v64_v35 = vld [vmem:[%s724_s1 + $0xa8] sm:$0xff]  ;;  %v47_v37 = vld [vmem:[%s724_s1 + $0x20] sm:$0xff] }
   0xe   :  { %144 = vmatpush.msra.mxu1 %v69_v17  ;;  %174 = vmatpush.msra.mxu2 %v84_v18  ;;  %v63_v38 = vld [vmem:[%s724_s1 + $0xa0] sm:$0xff] }
   0xf   :  { %116 = vmatpush.msra.mxu0 %v52_v19  ;;  %380 = vmatmul.msk.f32.vlgmr.msra.gmra.mxu3 %vm97_vm0, %v30_v32 }
  0x10   :  { %145 = vmatpush.msra.mxu1 %v68_v20  ;;  %175 = vmatpush.msra.mxu2 %v83_v21 }
  0x11   :  { %117 = vmatpush.msra.mxu0 %v51_v22 }
  0x12   :  { %146 = vmatpush.msra.mxu1 %v67_v23  ;;  %176 = vmatpush.msra.mxu2 %v82_v24 }
  0x13   :  { %118 = vmatpush.msra.mxu0 %v50_v25 }
  0x14   :  { %147 = vmatpush.msra.mxu1 %v66_v26  ;;  %177 = vmatpush.msra.mxu2 %v81_v28 }
  0x15   :  { %119 = vmatpush.msra.mxu0 %v49_v29 }
  0x16   :  { %148 = vmatpush.msra.mxu1 %v65_v31  ;;  %178 = vmatpush.msra.mxu2 %v80_v33 }
  0x17   :  { %120 = vmatpush.msra.mxu0 %v48_v34 }
  0x18   :  { %12 = vsyncpa [#allocation3], 0  ;;  %149 = vmatpush.msra.mxu1 %v64_v35  ;;  %v78_v39 = vld [vmem:[%s724_s1 + $0x118] sm:$0xff]  ;;  %179 = vmatpush.msra.mxu2 %v79_v36  ;;  %v77_v42 = vld [vmem:[%s724_s1 + $0x110] sm:$0xff]  ;;  %vm242_vm1 = vcmask 523264   ;;  %vm330_vm2 = vcmask 261120  }
  0x19   :  { %v46_v40 = vld [vmem:[%s724_s1 + $0x18] sm:$0xff]  ;;  %121 = vmatpush.msra.mxu0 %v47_v37  ;;  %v45_v43 = vld [vmem:[%s724_s1 + $0x10] sm:$0xff]  ;;  %v76_v46 = vld [vmem:[%s724_s1 + $0x108] sm:$0xff]  ;;  %s371_s15 = sshll.u32 %s730_s7, 4  ;;  %s372_s15 = int_to_ptr.hbm [resolvable:$true] %s371_s15 }
  0x1a   :  { %v62_v41 = vld [vmem:[%s724_s1 + $0x98] sm:$0xff]  ;;  %150 = vmatpush.msra.mxu1 %v63_v38  ;;  %180 = vmatpush.msra.mxu2 %v78_v39  ;;  %v61_v44 = vld [vmem:[%s724_s1 + $0x90] sm:$0xff]  ;;  %v44_v47 = vld [vmem:[%s724_s1 + $0x8] sm:$0xff] }
  0x1b   :  { %122 = vmatpush.msra.mxu0 %v46_v40  ;;  %v34_v45 = vld [vmem:[%s723_s0 + $0x38] sm:$0xff]  ;;  %v60_v48 = vld [vmem:[%s724_s1 + $0x88] sm:$0xff]  ;;  %v75_v50 = vld [vmem:[%s724_s1 + $0x100] sm:$0xff] }
  0x1c   :  { %151 = vmatpush.msra.mxu1 %v62_v41  ;;  %181 = vmatpush.msra.mxu2 %v77_v42  ;;  %v237_v49 = vld [vmem:[%s726_s3 + $0x38] sm:$0xff]  ;;  %v43_v51 = vld [vmem:[%s724_s1] sm:$0xff]  ;;  %v29_v52 = vld [vmem:[%s723_s0 + $0x10] sm:$0xff] }
  0x1d   :  { %123 = vmatpush.msra.mxu0 %v45_v43  ;;  %381 = vmatmul.msk.f32.gmra.mxu3 %vm97_vm0, %v34_v45  ;;  %v27_v53 = vld [vmem:[%s723_s0] sm:$0xff]  ;;  %v236_v55 = vld [vmem:[%s726_s3 + $0x30] sm:$0xff]  ;;  %v28_v56 = vld [vmem:[%s723_s0 + $0x8] sm:$0xff] }
  0x1e   :  { %152 = vmatpush.msra.mxu1 %v61_v44  ;;  %182 = vmatpush.msra.mxu2 %v76_v46  ;;  %v59_v54 = vld [vmem:[%s724_s1 + $0x80] sm:$0xff]  ;;  %v38_v57 = vld [vmem:[%s723_s0 + $0x58] sm:$0xff]  ;;  %v33_v58 = vld [vmem:[%s723_s0 + $0x30] sm:$0xff] }
  0x1f   :  { %124 = vmatpush.msra.mxu0 %v44_v47  ;;  %263 = vmatpush.msrb.mxu3 %v237_v49  ;;  %v31_v59 = vld [vmem:[%s723_s0 + $0x20] sm:$0xff]  ;;  %v32_v60 = vld [vmem:[%s723_s0 + $0x28] sm:$0xff]  ;;  %v42_v61 = vld [vmem:[%s723_s0 + $0x78] sm:$0xff] }
  0x20   :  { %153 = vmatpush.msra.mxu1 %v60_v48  ;;  %183 = vmatpush.msra.mxu2 %v75_v50  ;;  %v37_v62 = vld [vmem:[%s723_s0 + $0x50] sm:$0xff]  ;;  %v35_v63 = vld [vmem:[%s723_s0 + $0x40] sm:$0xff]  ;;  %v36_v0 = vld [vmem:[%s723_s0 + $0x48] sm:$0xff]  ;;  %v428_v50 = vmov 0  }
  0x21   :  { %125 = vmatpush.msra.mxu0 %v43_v51  ;;  %184 = vmatmul.f32.vlgmr.msra.gmra.mxu2 %v29_v52  ;;  %v41_v1 = vld [vmem:[%s723_s0 + $0x70] sm:$0xff]  ;;  %v39_v2 = vld [vmem:[%s723_s0 + $0x60] sm:$0xff]  ;;  %v40_v3 = vld [vmem:[%s723_s0 + $0x68] sm:$0xff] }
  0x22   :  { %126 = vmatmul.f32.vlgmr.msra.gmra.mxu0 %v27_v53  ;;  %154 = vmatpush.msra.mxu1 %v59_v54  ;;  %v235_v4 = vld [vmem:[%s726_s3 + $0x28] sm:$0xff]  ;;  %v234_v5 = vld [vmem:[%s726_s3 + $0x20] sm:$0xff]  ;;  %v233_v6 = vld [vmem:[%s726_s3 + $0x18] sm:$0xff] }
  0x23   :  { %264 = vmatpush.msrb.mxu3 %v236_v55  ;;  %155 = vmatmul.f32.vlgmr.msra.gmra.mxu1 %v28_v56  ;;  %v232_v7 = vld [vmem:[%s726_s3 + $0x10] sm:$0xff]  ;;  %v231_v8 = vld [vmem:[%s726_s3 + $0x8] sm:$0xff]  ;;  %v230_v9 = vld [vmem:[%s726_s3] sm:$0xff] }
  0x24   :  { %v396_v10 = vld [vmem:[%s725_s2] ss:$0 sm:$0xff]  ;;  %395 = vset.pattern.permute.xlu0 %v428_v50 }
  0x25   :  { %382 = vmatmul.msk.f32.gmra.mxu3 %vm97_vm0, %v38_v57  ;;  %v289_v49 = vld [vmem:[%s729_s6] sm:$0xff] }
  0x26   :  { %265 = vmatpush.msrb.mxu3 %v235_v4  ;;  %292 = vperm.xlu0 %395, %v289_v49   ;;  %v397_v52 = vld [vmem:[%s727_s4] ss:$0 sm:$0xff]  ;;  %s429_s4 = smov [#allocation2]  }
  0x28   :  { %266 = vmatpush.msrb.mxu3 %v234_v5 }
  0x29   :  { %187 = vmatmul.f32.gmra.mxu2 %v33_v58 }
  0x2a   :  { %129 = vmatmul.f32.gmra.mxu0 %v31_v59  ;;  %267 = vmatpush.msrb.mxu3 %v233_v6 }
  0x2b   :  { %158 = vmatmul.f32.gmra.mxu1 %v32_v60 }
  0x2c   :  { %268 = vmatpush.msrb.mxu3 %v232_v7 }
  0x2d   :  { %383 = vmatmul.msk.f32.gmra.mxu3 %vm97_vm0, %v42_v61 }
  0x2e   :  { %269 = vmatpush.msrb.mxu3 %v231_v8 }
  0x30   :  { %270 = vmatpush.msrb.mxu3 %v230_v9 }
  0x31   :  { %190 = vmatmul.f32.gmra.mxu2 %v37_v62  ;;  %v288_v62 = vld [vmem:[%s728_s5] sm:$0xff]  ;;  %s369_s5 = sshll.u32 %s429_s4, 4  ;;  %s370_s5 = int_to_ptr.vmem [resolvable:$true] %s369_s5 }
  0x32   :  { %132 = vmatmul.f32.gmra.mxu0 %v35_v63 }
  0x33   :  { %161 = vmatmul.f32.gmra.mxu1 %v36_v0 }
  0x39   :  { %193 = vmatmul.f32.gmra.mxu2 %v41_v1 }
  0x3a   :  { %135 = vmatmul.f32.gmra.mxu0 %v39_v2 }
  0x3b   :  { %164 = vmatmul.f32.gmra.mxu1 %v40_v3 }
  0x92   :  { %v214_v12 = vpop.f32.mrf.mxu3 }
  0x98   :  { %v293_v63 = vpop.permute.xlu0 %292 }
  0x9f   :  { %v127_v11 = vpop.f32.mrf.mxu0 }
  0xa0   :  { %v128_v13 = vadd.f32 %v396_v10, %v127_v11  ;;  %v156_v14 = vpop.f32.mrf.mxu1  ;;  %v217_v22 = vpop.f32.mrf.mxu3 }
  0xa2   :  { %v157_v15 = vadd.f32 %v156_v14, %v128_v13 }
  0xa4   :  { %v185_v16 = vpop.f32.mrf.mxu2 }
  0xa5   :  { %v186_v17 = vadd.f32 %v185_v16, %v157_v15 }
  0xa7   :  { %v130_v18 = vpop.f32.mrf.mxu0  ;;  %v215_v19 = vadd.f32 %v214_v12, %v186_v17 }
  0xa8   :  { %v131_v20 = vadd.f32 %v396_v10, %v130_v18  ;;  %v159_v21 = vpop.f32.mrf.mxu1  ;;  %v220_v33 = vpop.f32.mrf.mxu3 }
  0xa9   :  { %v226_v23 = vmax.f32 %v215_v19, 0.0 }
  0xaa   :  { %v160_v24 = vadd.f32 %v159_v21, %v131_v20 }
  0xab   :  { %384 = vmatmul.msk.f32.vlgmr.msrb.gmra.mxu3 %vm242_vm1, %v226_v23 }
  0xac   :  { %v188_v25 = vpop.f32.mrf.mxu2 }
  0xad   :  { %v189_v26 = vadd.f32 %v188_v25, %v160_v24 }
  0xaf   :  { %v133_v27 = vpop.f32.mrf.mxu0  ;;  %v218_v28 = vadd.f32 %v217_v22, %v189_v26 }
  0xb0   :  { %v134_v29 = vadd.f32 %v396_v10, %v133_v27  ;;  %v162_v30 = vpop.f32.mrf.mxu1  ;;  %v223_v43 = vpop.f32.mrf.mxu3 }
  0xb1   :  { %v227_v31 = vmax.f32 %v218_v28, 0.0 }
  0xb2   :  { %v163_v32 = vadd.f32 %v162_v30, %v134_v29 }
  0xb3   :  { %385 = vmatmul.msk.f32.gmra.mxu3 %vm242_vm1, %v227_v31 }
  0xb4   :  { %v191_v34 = vpop.f32.mrf.mxu2 }
  0xb5   :  { %v192_v35 = vadd.f32 %v191_v34, %v163_v32 }
  0xb7   :  { %v136_v36 = vpop.f32.mrf.mxu0  ;;  %v221_v37 = vadd.f32 %v220_v33, %v192_v35 }
  0xb8   :  { %v137_v38 = vadd.f32 %v396_v10, %v136_v36  ;;  %v165_v39 = vpop.f32.mrf.mxu1 }
  0xb9   :  { %v228_v40 = vmax.f32 %v221_v37, 0.0 }
  0xba   :  { %v166_v41 = vadd.f32 %v165_v39, %v137_v38 }
  0xbb   :  { %386 = vmatmul.msk.f32.gmra.mxu3 %vm242_vm1, %v228_v40 }
  0xbc   :  { %v194_v42 = vpop.f32.mrf.mxu2 }
  0xbd   :  { %v195_v44 = vadd.f32 %v194_v42, %v166_v41 }
  0xbf   :  { %v224_v45 = vadd.f32 %v223_v43, %v195_v44 }
  0xc1   :  { %v229_v46 = vmax.f32 %v224_v45, 0.0 }
  0xc3   :  { %387 = vmatmul.msk.f32.gmra.mxu3 %vm242_vm1, %v229_v46 }
 0x12e   :  { %v272_v47 = vpop.f32.mrf.mxu3 }
 0x12f   :  { %v273_v59 = vadd.f32 %v397_v52, %v272_v47 }
 0x131   :  { %v284_v61 = vmax.f32 %v273_v59, 0.0 }
 0x136   :  { %v275_v48 = vpop.f32.mrf.mxu3 }
 0x137   :  { %v276_v57 = vadd.f32 %v397_v52, %v275_v48 }
 0x139   :  { %v285_v60 = vmax.f32 %v276_v57, 0.0 }
 0x13e   :  { %v278_v51 = vpop.f32.mrf.mxu3 }
 0x13f   :  { %v279_v55 = vadd.f32 %v397_v52, %v278_v51 }
 0x141   :  { %v286_v58 = vmax.f32 %v279_v55, 0.0 }
 0x146   :  { %v281_v53 = vpop.f32.mrf.mxu3 }
 0x147   :  { %v282_v54 = vadd.f32 %v397_v52, %v281_v53 }
 0x149   :  { %v287_v56 = vmax.f32 %v282_v54, 0.0 }
 0x14b   :  { %388 = vmatpush.xpose.msk.msrb.mxu0 %vm97_vm0, %v287_v56 }
 0x14f   :  { %389 = vmatpush.xpose.msk.msrb.mxu0 %vm97_vm0, %v286_v58 }
 0x153   :  { %390 = vmatpush.xpose.msk.msrb.mxu0 %vm97_vm0, %v285_v60 }
 0x157   :  { %391 = vmatpush.xpose.msk.msrb.mxu0 %vm97_vm0, %v284_v61 }
 0x15a   :  { %392 = vmatmul.msk.f32.vlgmr.msrb.gmra.mxu0 %vm97_vm0, %v288_v62 }
 0x1d7   :  { %v327_v0 = vpop.f32.mrf.mxu0 }
 0x1d8   :  { %v328_v1 = vadd.f32 %v327_v0, %v293_v63 }
 0x1da   :  { %v331_v2 = vsel %vm330_vm2, %v328_v1, -inf }
 0x1db   :  { %v332_v3 = vrot.slane %v331_v2, 4 }
 0x1dd   :  { %v333_v4 = vmax.f32 %v331_v2, %v332_v3 }
 0x1df   :  { %v334_v5 = vrot.slane %v333_v4, 2 }
 0x1e1   :  { %v335_v6 = vmax.f32 %v333_v4, %v334_v5 }
 0x1e3   :  { %v336_v7 = vrot.slane %v335_v6, 1 }
 0x1e5   :  { %v337_v8 = vmax.f32 %v335_v6, %v336_v7 }
 0x1e7   :  { %v338_v9 = vsub.f32 %v328_v1, %v337_v8 }
 0x1e9   :  { %v339_v10 = vmul.f32 1.442695, %v338_v9 }
 0x1eb   :  { %398 = vpow2.f32 %v339_v10 }
 0x1f1   :  { %v399_v11 = vpop.eup %398 }
 0x1f2   :  { %v341_v12 = vsel %vm330_vm2, %v399_v11, 0.0 }
 0x1f3   :  { %v342_v13 = vrot.slane %v341_v12, 4 }
 0x1f5   :  { %v343_v14 = vadd.f32 %v342_v13, %v341_v12 }
 0x1f7   :  { %v344_v15 = vrot.slane %v343_v14, 2 }
 0x1f9   :  { %v345_v16 = vadd.f32 %v344_v15, %v343_v14 }
 0x1fb   :  { %v346_v17 = vrot.slane %v345_v16, 1 }
 0x1fd   :  { %v347_v18 = vadd.f32 %v346_v17, %v345_v16 }
 0x1ff   :  { %400 = vrcp.f32 %v347_v18  ;;  %v359_v22 = vand.u32 2147483648, %v347_v18  ;;  %v357_v24 = vand.u32 2147483647, %v347_v18  ;;  %vm353_vm4 = vweird.f32 %v347_v18 }
 0x201   :  { %v360_v26 = vor.u32 1.1754944e-38, %v359_v22  ;;  %vm358_vm6 = vcmp.eq.f32.partialorder %v357_v24, 8.507059e+37 }
 0x205   :  { %v401_v19 = vpop.eup %400 }
 0x206   :  { %v349_v20 = vmul.f32 %v401_v19, %v347_v18  ;;  %vm354_vm3 = vweird.f32 %v401_v19 }
 0x207   :  { %vm355_vm5 = vmor %vm353_vm4, %vm354_vm3 }
 0x208   :  { %v350_v21 = vsub.f32 1.0, %v349_v20 }
 0x20a   :  { %v351_v23 = vmul.f32 %v401_v19, %v350_v21 }
 0x20c   :  { %v352_v25 = vadd.f32 %v401_v19, %v351_v23 }
 0x20e   :  { %v356_v27 = vsel %vm355_vm5, %v401_v19, %v352_v25 }
 0x20f   :  { %v361_v28 = vsel %vm358_vm6, %v360_v26, %v356_v27 }
 0x210   :  { %v362_v29 = vmul.f32 %v399_v11, %v361_v28 }
 0x212   :  { %363 = vst.msk [vmem:[#allocation2] sm:$0xff] %vm330_vm2, %v362_v29 }
 0x213   :  { %374 = dma.vmem_to_hbm [thread:$0]  %s370_s5, 128, %s372_s15, [#allocation3]  }
 0x214   :  { %426 = dma.done.wait [#allocation3], 128  }
 0x215   :  { %427 = vsyncadd [#allocation3], 4294967168 }
 0x216   :  { %379 = vsyncpa [#allocation3], 1 }

</bundles_post_ra>
